<compile_context>
chip_gen: v5e
topology: v5e:2x2
jax: 0.10.0
libtpu: 0.0.40
codegen_flags: <defaults>
</compile_context>

<pallas_src>
import jax
import jax.numpy as jnp
from jax import lax
from jax.experimental import pallas as pl
from jax.experimental.pallas import tpu as pltpu

# Sobel kernels exactly as in the PyTorch module (conv2d = cross-correlation).
_KY = ((-1.0, -2.0, -1.0),
       ( 0.0,  0.0,  0.0),
       ( 1.0,  2.0,  1.0))          # self.kernel[0]; self.kernel[1] = _KY.T


def _sobel_kernel(x_ref, top_ref, bot_ref, o_ref):
    # x_ref  : (1, TH, W)    row tile of the (padded) input image
    # top_ref: (1, 1, 1, W)  row just above the tile (zeros at the image top)
    # bot_ref: (1, 1, 1, W)  row just below the tile (zeros at the image bottom)
    # o_ref  : (1, 2, TH, W) output tile (channel 0: ky, channel 1: kx = ky.T)
    x = x_ref[0].astype(jnp.float32)                                  # (TH, W)
    top = jnp.broadcast_to(top_ref[0, 0].astype(jnp.float32), x.shape)
    bot = jnp.broadcast_to(bot_ref[0, 0].astype(jnp.float32), x.shape)
    th, w = x.shape

    row = lax.broadcasted_iota(jnp.int32, (th, w), 0)
    col = lax.broadcasted_iota(jnp.int32, (th, w), 1)

    # Vertical neighbours: sublane roll (XLU) + halo patch on the edge rows.
    x_up = jnp.where(row == 0, top, pltpu.roll(x, 1, axis=0))             # x[r-1]
    x_dn = jnp.where(row == th - 1, bot, pltpu.roll(x, th - 1, axis=0))   # x[r+1]

    # Shared separable vertical pass (the *2 weight folded into adds).
    d = x_dn - x_up                     # [-1, 0, 1]^T down the rows
    s = (x_up + x_dn) + (x + x)         # [ 1, 2, 1]^T down the rows

    # Horizontal neighbours: lane roll (XLU) + zeroed boundary column.
    d_l = jnp.where(col == 0, 0.0, pltpu.roll(d, 1, axis=1))              # d[:, c-1]
    d_r = jnp.where(col == w - 1, 0.0, pltpu.roll(d, w - 1, axis=1))      # d[:, c+1]
    s_l = jnp.where(col == 0, 0.0, pltpu.roll(s, 1, axis=1))              # s[:, c-1]
    s_r = jnp.where(col == w - 1, 0.0, pltpu.roll(s, w - 1, axis=1))      # s[:, c+1]

    o_ref[0, 0] = (d_l + (d + d) + d_r).astype(o_ref.dtype)   # ky: [1, 2, 1]
    o_ref[0, 1] = (s_r - s_l).astype(o_ref.dtype)             # kx: [-1, 0, 1]


def _round_up(x, m):
    return ((x + m - 1) // m) * m


def _vmem_capacity_bytes():
    try:
        return int(pltpu.get_tpu_info().vmem_capacity_bytes)
    except Exception:
        return 128 * 1024 * 1024


def _pick_tile_h(H, W_pad, step, budget_bytes):
    """(TH, H_pad): row-tile height (multiple of `step`) and padded image H."""
    row_bytes = W_pad * 4                        # f32 intermediates dominate
    max_th = max(step, (budget_bytes // row_bytes) // step * step)
    if H <= max_th:                              # whole image in one row tile
        th = _round_up(H, step)
        return th, th
    best = None                                  # largest exact divisor of H
    th = step
    while th <= max_th:
        if H % th == 0:
            best = th
        th += step
    if best is not None:
        return best, H
    # No suitable divisor: zero-pad H to a multiple of max_th.  Zero tail rows
    # reproduce conv's zero padding; the extra output rows are sliced away.
    return max_th, _round_up(H, max_th)


def sobel(inputs, *, tile_h=None):
    """inputs: (N, 1, H, W) -> (N, 2, H, W); matches F.conv2d(kernel, padding=1)."""
    N, C, H, W = inputs.shape
    assert C == 1, "Sobel filter bank has in_channels=1"
    x = inputs[:, 0]                             # (N, H, W)
    itemsize = jnp.dtype(inputs.dtype).itemsize

    # Lane-dense last dim: one-time pad traffic is cheaper than masked vst on
    # 2/3 of the HBM traffic and keeps lane rolls on the aligned path.
    W_pad = _round_up(W, 128)
    if W_pad != W:
        x = jnp.pad(x, ((0, 0), (0, 0), (0, W_pad - W)))

    # Generation-aware tile budget, dtype-aware sublane step.
    step = max(8, 32 // itemsize)                # 8 (f32) / 16 (bf16) / 32 (i8)
    vmem_cap = _vmem_capacity_bytes()
    budget = max(1 << 20, min(8 << 20, int(vmem_cap * 0.6) // 18))

    if tile_h is None:
        TH, H_pad = _pick_tile_h(H, W_pad, step, budget)
    else:
        assert tile_h % 8 == 0, "tile_h must be a multiple of 8"
        TH, H_pad = tile_h, _round_up(H, tile_h)
    if H_pad != H:
        x = jnp.pad(x, ((0, 0), (0, H_pad - H), (0, 0)))
    nt = H_pad // TH

    # Halo rows: the single row above / below each row-tile (zeros at the
    # image borders).  Only 2*nt rows per image of extra HBM traffic.
    zrow = jnp.zeros((N, 1, W_pad), x.dtype)
    if nt > 1:
        top = jnp.concatenate([zrow, x[:, TH - 1:H_pad - 1:TH, :]], axis=1)
        bot = jnp.concatenate([x[:, TH:H_pad:TH, :], zrow], axis=1)
    else:
        top, bot = zrow, zrow
    top = top[:, :, None, :]                     # (N, nt, 1, W_pad)
    bot = bot[:, :, None, :]                     # (N, nt, 1, W_pad)

    # Footprint-based VMEM limit: double-buffered input + double-buffered
    # (2, TH, W) output + ~12 f32-tile intermediates + slack.
    tile_in = TH * W_pad * itemsize
    tile_f32 = TH * W_pad * 4
    footprint = 6 * tile_in + 12 * tile_f32 + (4 << 20)
    vmem_limit = int(min(vmem_cap * 3 // 4, max(32 << 20, footprint)))

    out = pl.pallas_call(
        _sobel_kernel,
        out_shape=jax.ShapeDtypeStruct((N, 2, H_pad, W_pad), inputs.dtype),
        grid_spec=pltpu.PrefetchScalarGridSpec(
            num_scalar_prefetch=0,
            grid=(N, nt),
            in_specs=[
                pl.BlockSpec((1, TH, W_pad), lambda n, i: (n, i, 0)),
                pl.BlockSpec((1, 1, 1, W_pad), lambda n, i: (n, i, 0, 0)),
                pl.BlockSpec((1, 1, 1, W_pad), lambda n, i: (n, i, 0, 0)),
            ],
            out_specs=pl.BlockSpec((1, 2, TH, W_pad), lambda n, i: (n, 0, i, 0)),
        ),
        compiler_params=pltpu.CompilerParams(
            dimension_semantics=("parallel", "parallel"),
            vmem_limit_bytes=vmem_limit),
    )(x, top, bot)

    return out[:, :, :H, :W]


def _sobel_ref(inputs):
    """Pure-JAX reference matching F.conv2d(inputs, kernel, padding=1)."""
    ky = jnp.array(_KY, dtype=inputs.dtype)
    kx = ky.T
    w = jnp.stack([ky, kx])[:, None]             # (2, 1, 3, 3)
    return lax.conv_general_dilated(
        inputs, w, window_strides=(1, 1), padding=((1, 1), (1, 1)),
        dimension_numbers=("NCHW", "OIHW", "NCHW"))


if __name__ == "__main__":
    # Small shape consistent with the module (N=2, single input channel).
    key = jax.random.PRNGKey(0)
    x = jax.random.normal(key, (2, 1, 16, 16), dtype=jnp.float32)

    out = sobel(x)
    jax.block_until_ready(out)
    assert out.shape == (2, 2, 16, 16)
    assert jnp.allclose(out, _sobel_ref(x), atol=1e-5, rtol=1e-5)

    # Multi-row-tile path (halo rows) with a lane-aligned width.
    x2 = jax.random.normal(jax.random.PRNGKey(1), (1, 1, 64, 128), jnp.float32)
    out2 = sobel(x2, tile_h=16)                  # 4 row tiles of 16 rows
    jax.block_until_ready(out2)
    assert jnp.allclose(out2, _sobel_ref(x2), atol=1e-5, rtol=1e-5)

    # Ragged H (no divisor): exercises the zero-pad-H tail path.
    x3 = jax.random.normal(jax.random.PRNGKey(2), (1, 1, 40, 128), jnp.float32)
    out3 = sobel(x3, tile_h=16)                  # H padded 40 -> 48, 3 tiles
    jax.block_until_ready(out3)
    assert jnp.allclose(out3, _sobel_ref(x3), atol=1e-5, rtol=1e-5)

    print("KERNEL_OK")
</pallas_src>

<mosaic_0001>
module attributes {stable_mosaic.version = 11 : i64} {
  func.func @_sobel_kernel(%arg0: i32, %arg1: i32, %arg2: memref<1x16x128xf32, #tpu.memory_space<vmem>>, %arg3: memref<1x1x1x128xf32, #tpu.memory_space<vmem>>, %arg4: memref<1x1x1x128xf32, #tpu.memory_space<vmem>>, %arg5: memref<1x2x16x128xf32, #tpu.memory_space<vmem>>) attributes {dimension_semantics = [#tpu.dimension_semantics<parallel>, #tpu.dimension_semantics<parallel>], iteration_bounds = array<i64: 2, 1>, scalar_prefetch = 0 : i64, scratch_operands = 0 : i64, tpu.core_type = #tpu.core_type<tc>, window_params = [{transform_indices = @transform_0, window_bounds = array<i64: 1, 16, 128>}, {transform_indices = @transform_1, window_bounds = array<i64: 1, 1, 1, 128>}, {transform_indices = @transform_2, window_bounds = array<i64: 1, 1, 1, 128>}, {transform_indices = @transform_3, window_bounds = array<i64: 1, 2, 16, 128>}]} {
    %c0 = arith.constant 0 : index
    %c0_0 = arith.constant 0 : index
    %c0_1 = arith.constant 0 : index
    %0 = vector.load %arg2[%c0, %c0_0, %c0_1] : memref<1x16x128xf32, #tpu.memory_space<vmem>>, vector<1x16x128xf32>
    %1 = vector.shape_cast %0 : vector<1x16x128xf32> to vector<16x128xf32>
    %c0_2 = arith.constant 0 : index
    %c0_3 = arith.constant 0 : index
    %c0_4 = arith.constant 0 : index
    %c0_5 = arith.constant 0 : index
    %2 = vector.load %arg3[%c0_2, %c0_3, %c0_4, %c0_5] : memref<1x1x1x128xf32, #tpu.memory_space<vmem>>, vector<1x1x1x128xf32>
    %3 = vector.shape_cast %2 : vector<1x1x1x128xf32> to vector<1x128xf32>
    %4 = vector.shape_cast %3 : vector<1x128xf32> to vector<1x128xf32>
    %5 = vector.broadcast %4 : vector<1x128xf32> to vector<16x128xf32>
    %c0_6 = arith.constant 0 : index
    %c0_7 = arith.constant 0 : index
    %c0_8 = arith.constant 0 : index
    %c0_9 = arith.constant 0 : index
    %6 = vector.load %arg4[%c0_6, %c0_7, %c0_8, %c0_9] : memref<1x1x1x128xf32, #tpu.memory_space<vmem>>, vector<1x1x1x128xf32>
    %7 = vector.shape_cast %6 : vector<1x1x1x128xf32> to vector<1x128xf32>
    %8 = vector.shape_cast %7 : vector<1x128xf32> to vector<1x128xf32>
    %9 = vector.broadcast %8 : vector<1x128xf32> to vector<16x128xf32>
    %10 = tpu.iota {dimensions = array<i32: 0>} : vector<16x128xi32>
    %11 = tpu.iota {dimensions = array<i32: 1>} : vector<16x128xi32>
    %c0_i32 = arith.constant 0 : i32
    %12 = vector.broadcast %c0_i32 : i32 to vector<16x128xi32>
    %13 = arith.cmpi eq, %10, %12 : vector<16x128xi32>
    %c1_i32 = arith.constant 1 : i32
    %14 = tpu.dynamic_rotate %1 by %c1_i32 dim 0 : vector<16x128xf32>, i32 -> vector<16x128xf32>
    %15 = arith.select %13, %5, %14 : vector<16x128xi1>, vector<16x128xf32>
    %c15_i32 = arith.constant 15 : i32
    %16 = vector.broadcast %c15_i32 : i32 to vector<16x128xi32>
    %17 = arith.cmpi eq, %10, %16 : vector<16x128xi32>
    %c15_i32_10 = arith.constant 15 : i32
    %18 = tpu.dynamic_rotate %1 by %c15_i32_10 dim 0 : vector<16x128xf32>, i32 -> vector<16x128xf32>
    %19 = arith.select %17, %9, %18 : vector<16x128xi1>, vector<16x128xf32>
    %20 = arith.subf %19, %15 : vector<16x128xf32>
    %21 = arith.addf %15, %19 : vector<16x128xf32>
    %22 = arith.addf %1, %1 : vector<16x128xf32>
    %23 = arith.addf %21, %22 : vector<16x128xf32>
    %c0_i32_11 = arith.constant 0 : i32
    %24 = vector.broadcast %c0_i32_11 : i32 to vector<16x128xi32>
    %25 = arith.cmpi eq, %11, %24 : vector<16x128xi32>
    %c1_i32_12 = arith.constant 1 : i32
    %26 = tpu.dynamic_rotate %20 by %c1_i32_12 dim 1 : vector<16x128xf32>, i32 -> vector<16x128xf32>
    %cst = arith.constant 0.000000e+00 : f32
    %27 = vector.broadcast %cst : f32 to vector<16x128xf32>
    %28 = arith.select %25, %27, %26 : vector<16x128xi1>, vector<16x128xf32>
    %c127_i32 = arith.constant 127 : i32
    %29 = vector.broadcast %c127_i32 : i32 to vector<16x128xi32>
    %30 = arith.cmpi eq, %11, %29 : vector<16x128xi32>
    %c127_i32_13 = arith.constant 127 : i32
    %31 = tpu.dynamic_rotate %20 by %c127_i32_13 dim 1 : vector<16x128xf32>, i32 -> vector<16x128xf32>
    %cst_14 = arith.constant 0.000000e+00 : f32
    %32 = vector.broadcast %cst_14 : f32 to vector<16x128xf32>
    %33 = arith.select %30, %32, %31 : vector<16x128xi1>, vector<16x128xf32>
    %c0_i32_15 = arith.constant 0 : i32
    %34 = vector.broadcast %c0_i32_15 : i32 to vector<16x128xi32>
    %35 = arith.cmpi eq, %11, %34 : vector<16x128xi32>
    %c1_i32_16 = arith.constant 1 : i32
    %36 = tpu.dynamic_rotate %23 by %c1_i32_16 dim 1 : vector<16x128xf32>, i32 -> vector<16x128xf32>
    %cst_17 = arith.constant 0.000000e+00 : f32
    %37 = vector.broadcast %cst_17 : f32 to vector<16x128xf32>
    %38 = arith.select %35, %37, %36 : vector<16x128xi1>, vector<16x128xf32>
    %c127_i32_18 = arith.constant 127 : i32
    %39 = vector.broadcast %c127_i32_18 : i32 to vector<16x128xi32>
    %40 = arith.cmpi eq, %11, %39 : vector<16x128xi32>
    %c127_i32_19 = arith.constant 127 : i32
    %41 = tpu.dynamic_rotate %23 by %c127_i32_19 dim 1 : vector<16x128xf32>, i32 -> vector<16x128xf32>
    %cst_20 = arith.constant 0.000000e+00 : f32
    %42 = vector.broadcast %cst_20 : f32 to vector<16x128xf32>
    %43 = arith.select %40, %42, %41 : vector<16x128xi1>, vector<16x128xf32>
    %44 = arith.addf %20, %20 : vector<16x128xf32>
    %45 = arith.addf %28, %44 : vector<16x128xf32>
    %46 = arith.addf %45, %33 : vector<16x128xf32>
    %c0_21 = arith.constant 0 : index
    %c0_22 = arith.constant 0 : index
    %c0_23 = arith.constant 0 : index
    %c0_24 = arith.constant 0 : index
    %47 = vector.load %arg5[%c0_21, %c0_22, %c0_23, %c0_24] : memref<1x2x16x128xf32, #tpu.memory_space<vmem>>, vector<1x1x16x128xf32>
    %48 = vector.shape_cast %47 : vector<1x1x16x128xf32> to vector<16x128xf32>
    %49 = vector.shape_cast %46 : vector<16x128xf32> to vector<1x1x16x128xf32>
    tpu.vector_store %arg5[%c0_21, %c0_22, %c0_23, %c0_24], %49 {strides = array<i32>} : memref<1x2x16x128xf32, #tpu.memory_space<vmem>>, vector<1x1x16x128xf32>,
    %50 = arith.subf %43, %38 : vector<16x128xf32>
    %c0_25 = arith.constant 0 : index
    %c1 = arith.constant 1 : index
    %c0_26 = arith.constant 0 : index
    %c0_27 = arith.constant 0 : index
    %51 = vector.load %arg5[%c0_25, %c1, %c0_26, %c0_27] : memref<1x2x16x128xf32, #tpu.memory_space<vmem>>, vector<1x1x16x128xf32>
    %52 = vector.shape_cast %51 : vector<1x1x16x128xf32> to vector<16x128xf32>
    %53 = vector.shape_cast %50 : vector<16x128xf32> to vector<1x1x16x128xf32>
    tpu.vector_store %arg5[%c0_25, %c1, %c0_26, %c0_27], %53 {strides = array<i32>} : memref<1x2x16x128xf32, #tpu.memory_space<vmem>>, vector<1x1x16x128xf32>,
    return
  }
  func.func @transform_0(%arg0: i32, %arg1: i32) -> (i32, i32, i32) {
    %c0_i32 = arith.constant 0 : i32
    %c0_i32_0 = arith.constant 0 : i32
    return %arg0, %arg1, %c0_i32 : i32, i32, i32
  }
  func.func @transform_1(%arg0: i32, %arg1: i32) -> (i32, i32, i32, i32) {
    %c0_i32 = arith.constant 0 : i32
    %c0_i32_0 = arith.constant 0 : i32
    %c0_i32_1 = arith.constant 0 : i32
    return %arg0, %arg1, %c0_i32, %c0_i32_0 : i32, i32, i32, i32
  }
  func.func @transform_2(%arg0: i32, %arg1: i32) -> (i32, i32, i32, i32) {
    %c0_i32 = arith.constant 0 : i32
    %c0_i32_0 = arith.constant 0 : i32
    %c0_i32_1 = arith.constant 0 : i32
    return %arg0, %arg1, %c0_i32, %c0_i32_0 : i32, i32, i32, i32
  }
  func.func @transform_3(%arg0: i32, %arg1: i32) -> (i32, i32, i32, i32) {
    %c0_i32 = arith.constant 0 : i32
    %c0_i32_0 = arith.constant 0 : i32
    %c0_i32_1 = arith.constant 0 : i32
    return %arg0, %c0_i32, %arg1, %c0_i32_0 : i32, i32, i32, i32
  }
}

</mosaic_0001>

<bundles_post_ra>
// kernel: tpu_custom_call.1
= control target key start
LH: loop header
LB: loop body
LE: loop exit
PB: predicated region body
PF: predicated region fallthrough
CT: control target
= control target key end

     0   :  { %s982_s0 = inlined_call_operand.hbm [shape: f32[2,16,128], index: 0, kind: input, shape index: {}]   ;;  %s983_s1 = inlined_call_operand.hbm [shape: f32[2,1,1,128], index: 1, kind: input, shape index: {}]   ;;  %s984_s2 = inlined_call_operand.hbm [shape: f32[2,1,1,128], index: 2, kind: input, shape index: {}]   ;;  %s985_s3 = inlined_call_operand.hbm [shape: f32[2,2,16,128], index: 3, kind: output, shape index: {}]  }
   0x1   :  { %991 = sst [smem:[#allocation17_spill]] %s983_s1 }
   0x2   :  { %8 = vsyncpa [#allocation3], 0 }
   0x3   :  { %10 = vsyncpa [#allocation3 + $0x1], 0 }
   0x4   :  { %11 = vsyncpa [#allocation6], 0 }
   0x5   :  { %13 = vsyncpa [#allocation6 + $0x1], 0 }
   0x6   :  { %14 = vsyncpa [#allocation4], 0 }
   0x7   :  { %16 = vsyncpa [#allocation4 + $0x1], 0  ;;  %s809_s12 = smov 0   ;;  %s811_s13 = smov 0  }
   0x8   :  { %s813_s14 = smov 0   ;;  %s815_s15 = smov 0  }
   0x9   :  { %s817_s16 = smov 0   ;;  %s819_s17 = smov 0  }
   0xa LB: > { %992 = sst [smem:[#allocation12_spill]] %s769_s14  ;;  %s840_s18 = sadd.s32 4294967295, %s781_s17   ;;  %s781_s17 = sphi %s819_s17, %s22_s17   ;;  %s777_s16 = sphi %s817_s16, %s1012_s16   ;;  %s773_s15 = sphi %s815_s15, %s1011_s15   ;;  %s769_s14 = sphi %s813_s14, %s1007_s14   ;;  %s765_s13 = sphi %s811_s13, %s1010_s13   ;;  %s761_s12 = sphi %s809_s12, %s1009_s12  }
   0xb   : > { %993 = sst [smem:[#allocation13_spill]] %s781_s17  ;;  %s507_s19 = sadd.s32 4294967294, %s781_s17  }
   0xc   : > { %s34_s20 = sadd.s32 1, %s777_s16  ;;  %s43_s21 = sadd.s32 1, %s769_s14 }
   0xd   : > { %p36_p0 = scmp.ge.s32.totalorder %s34_s20, 2  ;;  %p50_p1 = scmp.ne.s32.totalorder %s769_s14, %s765_s13 }
   0xe   : > { %p51_p2 = scmp.eq.s32.totalorder %s781_s17, 0  ;;  %p56_p3 = scmp.ne.s32.totalorder %s765_s13, %s761_s12 }
   0xf   : > { %s1014_s20 = smov (%p36_p0, %s34_s20), 0  ;;  %p57_p5 = scmp.eq.s32.totalorder %s840_s18, 0 }
  0x10   : > { %994 = sst [smem:[#allocation14_spill]] %s1014_s20  ;;  %p852_p4 = por %p51_p2, %p50_p1 }
  0x11   : > { %s38_s23 = ssub.s32 %s777_s16, %s1014_s20  ;;  %p138_p6 = scmp.eq.s32.totalorder %s840_s18, 1 }
  0x12   : > { %p41_p7 = scmp.eq.s32.totalorder %s38_s23, 0  ;;  %p860_p8 = por %p57_p5, %p56_p3 }
  0x13   : > { %p864_p9 = por %p138_p6, %p50_p1  ;;  %p144_p10 = scmp.eq.s32.totalorder %s507_s19, 1 }
  0x14   : > { %s869_s26 = scalar_select %p41_p7, %s769_s14, %s43_s21  }
  0x15   : > { %p871_p11 = por %p144_p10, %p56_p3  ;;  %p509_p12 = scmp.ge.s32.totalorder %s781_s17, 2 }
  0x16   : > { %998 = sst [smem:[#allocation15_spill]] %s869_s26  ;;  %p547_p13 = scmp.lt.s32.totalorder %s781_s17, 2 }
  0x17   : > { %s999_s27 = scalar_select %p871_p11, 1, 0 }
  0x18   : > { %s878_s28 = sand.u32 1, %s769_s14   ;;  %s188_s29 = sand.u32 1, %s781_s17  }
  0x19   : > { %1000 = sst [smem:[#allocation16_spill]] %s999_s27  ;;  %p883_p0 = pnand %p547_p13, %p852_p4 }
  0x1a   : > { %s1002_s1 = sld [smem:[#allocation17_spill]]  ;;  %s191_s7 = scalar_lea.vmem [#allocation5], %s878_s28 }
  0x1b   : > { %s199_s8 = sshll.u32 %s191_s7, 4  ;;  %s189_s10 = scalar_lea.sflag [#allocation6], %s188_s29  ;;  %s200_s8 = int_to_ptr.vmem [resolvable:$true] %s199_s8 }
  0x1c   : > { %p513_p1 = scmp.ge.s32.totalorder %s781_s17, 1  ;;  %p222_p2 = scmp.lt.s32.totalorder %s781_s17, 3 }
  0x1d   : > { %s510_s19 = sshll.u32 %s878_s28, 4  ;;  %s523_s21 = sshll.u32 %s777_s16, 4 }
  0x1e   : > { %p896_p3 = pnand %p513_p1, %p222_p2  ;;  %s175_s4 = scalar_lea.hbm %s982_s0, %s523_s21 }
  0x1f   : > { %s176_s5 = sshll.u32 %s175_s4, 4  ;;  %s168_s29 = scalar_lea.vmem [#allocation2], %s510_s19  ;;  %s177_s5 = int_to_ptr.hbm [resolvable:$true] %s176_s5 }
  0x20   : > { %s195_s6 = scalar_lea.hbm %s1002_s1, %s777_s16  ;;  %s165_s7 = scalar_lea.sflag [#allocation3], %s878_s28 }
  0x21   : > { %s197_s9 = sshll.u32 %s195_s6, 4  ;;  %s178_s6 = sshll.u32 %s168_s29, 4  ;;  %s198_s9 = int_to_ptr.hbm [resolvable:$true] %s197_s9  ;;  %s179_s6 = int_to_ptr.vmem [resolvable:$true] %s178_s6 }
  0x22   : > { %539 = dma.hbm_to_vmem [thread:$0]  (!%p883_p0), %s198_s9, 16, %s200_s8, %s189_s10  }
  0x23   : > { %s783_s8 = smov 128   ;;  %s784_s9 = smov 8  }
  0x24   : > { %536 = dma.hbm_to_vmem [thread:$0]  (!%p883_p0), %s177_s5, 256, %s179_s6, %s165_s7, %s783_s8, %s783_s8, %s784_s9  }
  0x25   : > { %s213_s26 = scalar_lea.hbm %s984_s2, %s777_s16  ;;  %s209_s17 = scalar_lea.vmem [#allocation7], %s878_s28 }
  0x26   : > { %s215_s14 = sshll.u32 %s213_s26, 4  ;;  %s217_s27 = sshll.u32 %s209_s17, 4  ;;  %s216_s14 = int_to_ptr.hbm [resolvable:$true] %s215_s14  ;;  %s218_s27 = int_to_ptr.vmem [resolvable:$true] %s217_s27 }
  0x27   : > { %542 = dma.hbm_to_vmem [thread:$0]  (!%p883_p0), %s216_s14, 16, %s218_s27, %s189_s10  }
  0x28   : > { %226 = sbr.rel (%p896_p3) target bundleno = 197 (0xc5), region = 32  ;;  %s918_s19 = sand.u32 (!%p896_p3), 1, %s765_s13  }
  0x29   : > { %s514_s21 = sshll.u32 (!%p896_p3), %s918_s19, 4  ;;  %s229_s22 = scalar_lea.sflag (!%p896_p3), [#allocation3], %s918_s19 }
  0x2a   : > { %s232_s1 = scalar_lea.vmem (!%p896_p3), [#allocation2], %s514_s21 }
  0x2d   : > { %748 = dma.done.wait (%p860_p8), %s229_s22, 256  }
  0x2e   : > { %750 = vsyncadd (%p860_p8), %s229_s22, 4294967040  ;;  %s238_s14 = sand.u32 1, %s840_s18   ;;  %s241_s20 = scalar_lea.vmem [#allocation5], %s918_s19 }
  0x2f   : > { %s239_s17 = scalar_lea.sflag [#allocation6], %s238_s14 }
  0x30   : > { %752 = dma.done.wait (%p860_p8), %s239_s17, 32  }
  0x31   : > { %754 = vsyncadd (%p860_p8), %s239_s17, 4294967264  ;;  %v294_v0 = vlaneseq  ;;  %v284_v2 = vld [vmem:[%s232_s1] sm:$0xff]  ;;  %v285_v3 = vld [vmem:[%s232_s1 + $0x8] sm:$0xff]  ;;  %s250_s18 = scalar_lea.vmem [#allocation7], %s918_s19  ;;  %s785_s24 = smov 127  }
  0x32   : > { %v603_v5 = vld [vmem:[%s241_s20] ss:$0 sm:$0xff]  ;;  %v301_v6 = vrot.slane %v284_v2, 7  ;;  %v302_v7 = vrot.slane %v285_v3, 7  ;;  %v310_v8 = vrot.slane %v284_v2, 1  ;;  %v311_v9 = vrot.slane %v285_v3, 1 }
  0x33   : > { %v295_v1 = vshrl.u32 %v294_v0, 7  ;;  %v321_v12 = vadd.f32 %v284_v2, %v284_v2  ;;  %v604_v14 = vld [vmem:[%s250_s18] ss:$0 sm:$0xff]  ;;  %s786_s26 = smov 1   ;;  %v322_v23 = vadd.f32 %v285_v3, %v285_v3  ;;  %v298_v25 = vand.u32 127, %v294_v0  ;;  %s515_s27 = sshll.u32 %s918_s19, 5 }
  0x34   : > { %s281_s28 = scalar_lea.vmem [#allocation8], %s515_s27  ;;  %s524_s30 = sshll.u32 %s773_s15, 5 }
  0x35   : > { %vm299_vm0 = vcmp.eq.s32.totalorder %v295_v1, 0  ;;  %vm303_vm1 = vcmp.lt.s32.totalorder %v295_v1, 1  ;;  %vm312_vm2 = vcmp.lt.s32.totalorder %v295_v1, 7  ;;  %v296_v4 = vadd.s32 8, %v295_v1  ;;  %s378_s23 = scalar_lea.hbm %s985_s3, %s524_s30  ;;  %s379_s4 = sshll.u32 %s281_s28, 4  ;;  %s380_s4 = int_to_ptr.vmem [resolvable:$true] %s379_s4 }
  0x36   : > { %v305_v10 = vsel %vm303_vm1, %v302_v7, %v301_v6  ;;  %v313_v11 = vsel %vm312_vm2, %v310_v8, %v311_v9  ;;  %v314_v16 = vsel %vm312_vm2, %v311_v9, %v310_v8  ;;  %v304_v19 = vsel %vm303_vm1, %v301_v6, %v302_v7  ;;  %s381_s5 = sshll.u32 %s378_s23, 4  ;;  %s365_s15 = scalar_lea.sflag [#allocation4], %s918_s19  ;;  %s382_s5 = int_to_ptr.hbm [resolvable:$true] %s381_s5 }
  0x37   : > { %v306_v13 = vsel %vm299_vm0, %v603_v5, %v305_v10  ;;  %vm309_vm3 = vcmp.eq.s32.totalorder %v296_v4, 15  ;;  %vm325_vm4 = vcmp.eq.s32.totalorder %v298_v25, 0  ;;  %vm332_vm5 = vcmp.eq.s32.totalorder %v298_v25, 127  ;;  %s709_s29 = sshra.s32 %s382_s5, 4  ;;  %s715_s9 = scalar_lea.hbm %s985_s3, 64  ;;  %s710_s29 = int_to_ptr.hbm [resolvable:$true] %s709_s29 }
  0x38   : > { %v317_v15 = vsub.f32 %v313_v11, %v306_v13  ;;  %v319_v17 = vadd.f32 %v313_v11, %v306_v13  ;;  %v316_v20 = vsel %vm309_vm3, %v604_v14, %v314_v16  ;;  %s711_s6 = scalar_lea.hbm %s710_s29, 32  ;;  %p716_p7 = scmp.lt.s32.totalorder %s710_s29, %s985_s3 }
  0x39   : > { %v318_v21 = vsub.f32 %v316_v20, %v304_v19  ;;  %v320_v22 = vadd.f32 %v316_v20, %v304_v19  ;;  %p712_p4 = scmp.ne.s32.totalorder %s710_s29, %s711_s6  ;;  %p717_p8 = scmp.lt.s32.totalorder %s715_s9, %s711_s6 }
  0x3a   : > { %333 = vrot.lane.b32.xlu1 %v317_v15, %s785_s24  ;;  %326 = vrot.lane.b32.xlu0 %v317_v15, %s786_s26  ;;  %v323_v18 = vadd.f32 %v321_v12, %v319_v17  ;;  %v351_v26 = vadd.f32 %v317_v15, %v317_v15 }
  0x3b   : > { %v324_v24 = vadd.f32 %v322_v23, %v320_v22  ;;  %v352_v34 = vadd.f32 %v318_v21, %v318_v21  ;;  %p713_p5 = pnand %p712_p4, %p864_p9  ;;  %p718_p10 = por %p717_p8, %p716_p7 }
  0x3c   : > { %339 = vrot.lane.b32.xlu2 %v323_v18, %s786_s26 }
  0x3d   : > { %p714_p6 = pneg %p713_p5 }
  0x3f   : > { %p719_p13 = pnand %p718_p10, %p714_p6 }
  0x42   : > { %335 = vrot.lane.b32.xlu1 %v318_v21, %s785_s24  ;;  %328 = vrot.lane.b32.xlu0 %v318_v21, %s786_s26 }
  0x44   : > { %341 = vrot.lane.b32.xlu2 %v324_v24, %s786_s26 }
  0x4a   : > { %347 = vrot.lane.b32.xlu1 %v324_v24, %s785_s24  ;;  %345 = vrot.lane.b32.xlu0 %v323_v18, %s785_s24 }
  0x96   : > { %v340_v31 = vpop.permute.xlu2 %339 }
  0x97   : > { %v343_v45 = vsel %vm325_vm4, 0.0, %v340_v31 }
  0x9e   : > { %v342_v41 = vpop.permute.xlu2 %341 }
  0x9f   : > { %v344_v42 = vsel %vm325_vm4, 0.0, %v342_v41 }
  0xac   : > { %v334_v27 = vpop.permute.xlu1 %333  ;;  %v327_v28 = vpop.permute.xlu0 %326 }
  0xad   : > { %v330_v29 = vsel %vm325_vm4, 0.0, %v327_v28  ;;  %v337_v32 = vsel %vm332_vm5, 0.0, %v334_v27 }
  0xae   : > { %v353_v30 = vadd.f32 %v351_v26, %v330_v29 }
  0xb0   : > { %v355_v33 = vadd.f32 %v353_v30, %v337_v32 }
  0xb2   : > { %357 = vst [vmem:[%s281_s28] sm:$0xff] %v355_v33 }
  0xb4   : > { %v336_v35 = vpop.permute.xlu1 %335  ;;  %v329_v36 = vpop.permute.xlu0 %328 }
  0xb5   : > { %v331_v37 = vsel %vm325_vm4, 0.0, %v329_v36  ;;  %v338_v39 = vsel %vm332_vm5, 0.0, %v336_v35 }
  0xb6   : > { %v354_v38 = vadd.f32 %v352_v34, %v331_v37 }
  0xb8   : > { %v356_v40 = vadd.f32 %v354_v38, %v338_v39 }
  0xba   : > { %358 = vst [vmem:[%s281_s28 + $0x8] sm:$0xff] %v356_v40 }
  0xbc   : > { %v348_v43 = vpop.permute.xlu1 %347  ;;  %v346_v44 = vpop.permute.xlu0 %345 }
  0xbd   : > { %v350_v46 = vsel %vm332_vm5, 0.0, %v348_v43  ;;  %v349_v47 = vsel %vm332_vm5, 0.0, %v346_v44 }
  0xbe   : > { %v360_v48 = vsub.f32 %v350_v46, %v344_v42  ;;  %v359_v49 = vsub.f32 %v349_v47, %v343_v45 }
  0xc0   : > { %517 = vst [vmem:[%s281_s28 + $0x18] sm:$0xff] %v360_v48 }
  0xc1   : > { %516 = vst [vmem:[%s281_s28 + $0x10] sm:$0xff] %v359_v49 }
  0xc2   : > { %722 = shalt.err (!%p719_p13)
}
  0xc3   : > { %s787_s19 = smov 128   ;;  %s788_s1 = smov 8  }
  0xc4   : > { %531 = dma.vmem_to_hbm [thread:$0]  (%p864_p9), %s380_s4, 512, %s382_s5, %s365_s15, %s787_s19, %s787_s19, %s788_s1  }
  0xc5 PF: > { %s1005_s17 = sld [smem:[#allocation13_spill]]  ;;  %s396_s20 = sand.u32 1, %s761_s12  }
  0xc6   : > { %p544_p0 = pnand %p509_p12, %p871_p11  ;;  %s397_s18 = scalar_lea.sflag [#allocation4], %s396_s20 }
  0xc8   : > { %p545_p1 = pneg %p544_p0 }
  0xca   : > { %756 = dma.done.wait (%p545_p1), %s397_s18, 512  }
  0xcb   : > { %758 = vsyncadd (%p545_p1), %s397_s18, 4294966784  ;;  %s22_s17 = sadd.s32 1, %s1005_s17   ;;  %s1006_s24 = sld [smem:[#allocation12_spill]] }
  0xcc   : > { %p19_p2 = scmp.ge.s32.totalorder %s22_s17, 4   ;;  %s1007_s14 = sld [smem:[#allocation15_spill]] }
  0xcd   : > { %s1008_s25 = sld [smem:[#allocation14_spill]]  ;;  %s1009_s12 = smov %s765_s13 }
  0xce   : > { %s1011_s15 = smov %s777_s16 }
  0xcf   :  { %21 = sbr.rel (!%p19_p2) target bundleno = 10 (0xa), region = 102 }
  0xd1   : > { %s1010_s13 = smov %s1006_s24 }
  0xd3   : > { %s1012_s16 = smov %s1008_s25 }
  0xd4   :  { %403 = vsyncpa [#allocation3], 1 }
  0xd5   :  { %405 = vsyncpa [#allocation3 + $0x1], 1 }
  0xd6   :  { %406 = vsyncpa [#allocation6], 1 }
  0xd7   :  { %408 = vsyncpa [#allocation6 + $0x1], 1 }
  0xd8   :  { %409 = vsyncpa [#allocation4], 1 }
  0xd9   :  { %411 = vsyncpa [#allocation4 + $0x1], 1 }

</bundles_post_ra>
